<compile_context>
chip_gen: v5e
topology: v5e:2x2
jax: 0.10.0
libtpu: 0.0.40
codegen_flags: <defaults>
</compile_context>

<pallas_src>
import functools
import math

import jax
import jax.numpy as jnp
from jax.experimental import pallas as pl
from jax.experimental.pallas import tpu as pltpu


_UNROLL_C_MAX = 64                      # unrolled per-class slices below this
_VMEM_PLAN_BUDGET = 24 * 1024 * 1024    # per-step plan: dbufs + f32 temporaries
_VMEM_LIMIT_BYTES = 40 * 1024 * 1024    # > v5e 16MiB scoped default, < v7x 64MiB


def _ohem_ce_kernel(logits_ref, labels_ref, loss_ref, cnt_ref, sum_ref, *,
                    ignore_lb, thresh):
    # logits_ref: (C, SUB, LANE)   labels_ref / loss_ref: (SUB, LANE)
    # cnt_ref / sum_ref: (1, LANE) per-lane partials of the {loss > thresh} set.
    lbl = labels_ref[...]
    C = logits_ref.shape[0]

    if C <= _UNROLL_C_MAX:
        # Two passes over the VMEM tile: (1) running max, (2) exp-sum fused with
        # the label gather (select-chain) -> only a handful of (SUB, LANE) f32
        # live values instead of a full (C, SUB, LANE) f32 temporary.
        m = logits_ref[0].astype(jnp.float32)
        for c in range(1, C):
            m = jnp.maximum(m, logits_ref[c].astype(jnp.float32))
        s = jnp.zeros_like(m)
        picked = jnp.zeros_like(m)
        for c in range(C):
            xc = logits_ref[c].astype(jnp.float32)
            s = s + jnp.exp(xc - m)
            picked = jnp.where(lbl == c, xc, picked)
    else:
        x = logits_ref[...].astype(jnp.float32)                  # (C, SUB, LANE)
        m = jnp.max(x, axis=0)
        s = jnp.sum(jnp.exp(x - m[None]), axis=0)
        cls = jax.lax.broadcasted_iota(jnp.int32, x.shape, 0)
        picked = jnp.sum(jnp.where(cls == lbl[None], x, 0.0), axis=0)

    # NOTE(v7x): if exp ever saturates the single EUP with bf16 inputs at
    # 3.2 TB/s, a bf16 exp path with f32 sum is the next lever; left as-is.
    loss = m + jnp.log(s) - picked                 # -log_softmax[label]
    loss = jnp.where(lbl != ignore_lb, loss, 0.0)  # reduction='none', ignore -> 0
    loss_ref[...] = loss

    gt = loss > thresh
    cnt_ref[...] = jnp.sum(gt.astype(jnp.int32), axis=0, keepdims=True)
    sum_ref[...] = jnp.sum(jnp.where(gt, loss, 0.0), axis=0, keepdims=True)


def _factor_tile(tile_px):
    """Split tile_px into (SUB, LANE), preferring SUB % 8 == 0 and LANE % 128 == 0."""
    if tile_px % 1024 == 0:
        q = tile_px // 1024
        a = 1
        for cand in range(min(8, q), 0, -1):
            if q % cand == 0:
                a = cand
                break
        return 8 * a, 128 * (q // a)
    if tile_px % 8 == 0:
        return 8, tile_px // 8
    return 1, tile_px


def _pick_tiling(N, C, HW, itemsize):
    """Return (tile_px, n_tiles, HW_pad) for the per-batch pixel axis."""
    # dtype- and path-aware per-pixel VMEM plan: logits double buffer +
    # label/loss double buffers + in-kernel f32 temporaries.
    if C <= _UNROLL_C_MAX:
        per_px = 2 * C * itemsize + 2 * 4 + 2 * 4 + 8 * 4
    else:
        per_px = 2 * C * itemsize + 3 * C * 4 + 2 * 4 + 2 * 4 + 8 * 4
    max_px = max(1024, (_VMEM_PLAN_BUDGET // per_px) // 1024 * 1024)

    # Keep >= ~8 grid steps overall (when the image is big enough) so both v7x
    # TensorCores stay busy and the pipeline has something to overlap.
    min_steps_per_batch = -(-8 // max(N, 1))
    if HW > min_steps_per_batch * 1024:
        max_px = max(1024, min(max_px, (HW // min_steps_per_batch) // 1024 * 1024))

    if HW <= max_px:
        return HW, 1, HW                      # single tile per batch, no padding

    # Prefer a multiple-of-1024 tile that divides HW exactly -> no logits pad.
    t = max_px
    while t >= 1024:
        if HW % t == 0:
            return t, HW // t, HW
        t -= 1024

    # Ragged fallback: minimal pad to a multiple of 1024, then tile that.
    # TODO(synk): the ragged tail could be masked in-kernel instead of paying a
    # one-off jnp.pad copy of the logits here.
    hw_pad = pl.cdiv(HW, 1024) * 1024
    t = max_px
    while hw_pad % t != 0:
        t -= 1024
    return t, hw_pad // t, hw_pad


def _per_pixel_ce(logits_nchw, labels_nhw, thresh, ignore_lb):
    """Per-pixel CE loss (P,), plus exact count/sum of losses > thresh."""
    N, C, H, W = logits_nchw.shape
    HW = H * W
    itemsize = jnp.dtype(logits_nchw.dtype).itemsize
    tile_px, n_tiles, hw_pad = _pick_tiling(N, C, HW, itemsize)
    sub, lane = _factor_tile(tile_px)

    logits = logits_nchw.reshape(N, C, HW)            # NCHW view: no transpose
    labels = labels_nhw.reshape(N, HW).astype(jnp.int32)
    if hw_pad != HW:
        logits = jnp.pad(logits, ((0, 0), (0, 0), (0, hw_pad - HW)))
        labels = jnp.pad(labels, ((0, 0), (0, hw_pad - HW)),
                         constant_values=ignore_lb)

    # contiguity-preserving splits of the minor pixel axis (free reshapes)
    logits = logits.reshape(N, C, n_tiles, sub, lane)
    labels = labels.reshape(N, n_tiles, sub, lane)

    loss, cnt_part, sum_part = pl.pallas_call(
        functools.partial(_ohem_ce_kernel, ignore_lb=ignore_lb, thresh=thresh),
        out_shape=(
            jax.ShapeDtypeStruct((N, n_tiles, sub, lane), jnp.float32),
            jax.ShapeDtypeStruct((N, n_tiles, 1, lane), jnp.int32),
            jax.ShapeDtypeStruct((N, n_tiles, 1, lane), jnp.float32),
        ),
        grid=(N, n_tiles),
        in_specs=[
            pl.BlockSpec((None, C, None, sub, lane), lambda n, t: (n, 0, t, 0, 0)),
            pl.BlockSpec((None, None, sub, lane), lambda n, t: (n, t, 0, 0)),
        ],
        out_specs=(
            pl.BlockSpec((None, None, sub, lane), lambda n, t: (n, t, 0, 0)),
            pl.BlockSpec((None, None, 1, lane), lambda n, t: (n, t, 0, 0)),
            pl.BlockSpec((None, None, 1, lane), lambda n, t: (n, t, 0, 0)),
        ),
        compiler_params=pltpu.CompilerParams(
            dimension_semantics=("parallel", "parallel"),
            vmem_limit_bytes=_VMEM_LIMIT_BYTES),
    )(logits, labels)

    loss = loss.reshape(N, hw_pad)
    if hw_pad != HW:
        loss = loss[:, :HW]
    cnt_gt = jnp.sum(cnt_part)            # int32 -> exact for any pixel count
    sum_gt = jnp.sum(sum_part)
    return loss.reshape(-1), cnt_gt, sum_gt


def _topk_vals(loss, k, base_chunk=8192):
    """Two-stage top-k (per-chunk then global) over the per-pixel losses."""
    P = loss.shape[0]
    chunk = max(base_chunk, 2 * k)        # never bypass the two-stage path
    if P <= chunk:
        return jax.lax.top_k(loss, k)[0]
    n_chunks = pl.cdiv(P, chunk)
    pad = n_chunks * chunk - P
    if pad:
        loss = jnp.pad(loss, (0, pad), constant_values=-jnp.inf)
    cand = jax.lax.top_k(loss.reshape(n_chunks, chunk), k)[0]   # (n_chunks, k)
    return jax.lax.top_k(cand.reshape(-1), k)[0]


def ohem_ce_loss(logits_nchw, labels_nhw, thresh_prob, n_min, ignore_lb=255):
    """Matches OhemCELoss.forward semantics (scalar f32 result)."""
    thresh = float(-math.log(float(thresh_prob)))   # static, like the torch buffer
    loss, cnt_gt, sum_gt = _per_pixel_ce(logits_nchw, labels_nhw, thresh, ignore_lb)

    # branch predicate: sorted_desc[n_min] > thresh <=> count(loss > thresh) > n_min
    cond = cnt_gt > n_min

    # branch 1: mean over losses strictly greater than thresh (from kernel partials)
    mean_gt = sum_gt / jnp.maximum(cnt_gt.astype(jnp.float32), 1.0)

    # branch 2: mean over the top n_min losses (only computed if selected).
    # TODO(synk): the descending sort / top-k selection has no clean in-kernel
    # Pallas equivalent; it is done with lax.top_k (two-stage) in the wrapper.
    def _mean_topk(l):
        return jnp.mean(_topk_vals(l, min(n_min, l.shape[0])))

    return jax.lax.cond(cond, lambda l: mean_gt, _mean_topk, loss)


def _reference(logits_nchw, labels_nhw, thresh_prob, n_min, ignore_lb=255):
    """Pure-JAX reference of the PyTorch module for a sanity check."""
    N, C, H, W = logits_nchw.shape
    x = jnp.transpose(logits_nchw, (0, 2, 3, 1)).reshape(-1, C).astype(jnp.float32)
    lbl = labels_nhw.reshape(-1).astype(jnp.int32)
    logp = jax.nn.log_softmax(x, axis=-1)
    picked = jnp.take_along_axis(
        logp, jnp.clip(lbl, 0, C - 1)[:, None], axis=-1)[:, 0]
    loss = jnp.where(lbl == ignore_lb, 0.0, -picked)
    loss_sorted = jnp.sort(loss)[::-1]
    thresh = -jnp.log(jnp.float32(thresh_prob))
    cond = loss_sorted[n_min] > thresh
    gt = loss > thresh
    mean_gt = jnp.sum(jnp.where(gt, loss, 0.0)) / jnp.maximum(jnp.sum(gt), 1)
    mean_topk = jnp.mean(loss_sorted[:n_min])
    return jnp.where(cond, mean_gt, mean_topk)


if __name__ == "__main__":
    key = jax.random.PRNGKey(0)
    k1, k2, k3 = jax.random.split(key, 3)

    N, C, H, W = 2, 4, 16, 16
    thresh_prob = 0.7
    n_min = 64
    ignore_lb = 255

    logits = jax.random.normal(k1, (N, C, H, W), dtype=jnp.float32) * 3.0
    labels = jax.random.randint(k2, (N, H, W), 0, C, dtype=jnp.int32)
    # sprinkle some ignored pixels
    ignore_mask = jax.random.uniform(k3, (N, H, W)) < 0.1
    labels = jnp.where(ignore_mask, ignore_lb, labels)

    loss_fn = jax.jit(functools.partial(
        ohem_ce_loss, thresh_prob=thresh_prob, n_min=n_min, ignore_lb=ignore_lb))

    # f32 logits path
    out = jax.block_until_ready(loss_fn(logits, labels))
    ref = _reference(logits, labels, thresh_prob, n_min, ignore_lb)
    assert jnp.allclose(out, ref, atol=1e-4, rtol=1e-4), (out, ref)

    # bf16 logits path (halves HBM traffic; kernel accumulates in f32)
    logits_bf16 = logits.astype(jnp.bfloat16)
    out_bf16 = jax.block_until_ready(loss_fn(logits_bf16, labels))
    ref_bf16 = _reference(logits_bf16, labels, thresh_prob, n_min, ignore_lb)
    assert jnp.allclose(out_bf16, ref_bf16, atol=5e-3, rtol=5e-3), (out_bf16, ref_bf16)

    print("KERNEL_OK")
</pallas_src>

<mosaic_0001>
module attributes {stable_mosaic.version = 11 : i64} {
  func.func @_ohem_ce_kernel(%arg0: i32, %arg1: i32, %arg2: memref<1x4x1x8x32xf32, #tpu.memory_space<vmem>>, %arg3: memref<1x1x8x32xi32, #tpu.memory_space<vmem>>, %arg4: memref<1x1x8x32xf32, #tpu.memory_space<vmem>>, %arg5: memref<1x1x1x32xi32, #tpu.memory_space<vmem>>, %arg6: memref<1x1x1x32xf32, #tpu.memory_space<vmem>>) attributes {dimension_semantics = [#tpu.dimension_semantics<parallel>, #tpu.dimension_semantics<parallel>], iteration_bounds = array<i64: 2, 1>, scalar_prefetch = 0 : i64, scratch_operands = 0 : i64, tpu.core_type = #tpu.core_type<tc>, window_params = [{transform_indices = @transform_0, window_bounds = array<i64: 1, 4, 1, 8, 32>}, {transform_indices = @transform_1, window_bounds = array<i64: 1, 1, 8, 32>}, {transform_indices = @transform_2, window_bounds = array<i64: 1, 1, 8, 32>}, {transform_indices = @transform_3, window_bounds = array<i64: 1, 1, 1, 32>}, {transform_indices = @transform_4, window_bounds = array<i64: 1, 1, 1, 32>}]} {
    %c0 = arith.constant 0 : index
    %c0_0 = arith.constant 0 : index
    %c0_1 = arith.constant 0 : index
    %c0_2 = arith.constant 0 : index
    %0 = vector.load %arg3[%c0, %c0_0, %c0_1, %c0_2] : memref<1x1x8x32xi32, #tpu.memory_space<vmem>>, vector<1x1x8x32xi32>
    %1 = vector.shape_cast %0 : vector<1x1x8x32xi32> to vector<8x32xi32>
    %c0_3 = arith.constant 0 : index
    %c0_4 = arith.constant 0 : index
    %c0_5 = arith.constant 0 : index
    %c0_6 = arith.constant 0 : index
    %c0_7 = arith.constant 0 : index
    %2 = vector.load %arg2[%c0_3, %c0_4, %c0_5, %c0_6, %c0_7] : memref<1x4x1x8x32xf32, #tpu.memory_space<vmem>>, vector<1x1x1x8x32xf32>
    %3 = vector.shape_cast %2 : vector<1x1x1x8x32xf32> to vector<8x32xf32>
    %c0_8 = arith.constant 0 : index
    %c1 = arith.constant 1 : index
    %c0_9 = arith.constant 0 : index
    %c0_10 = arith.constant 0 : index
    %c0_11 = arith.constant 0 : index
    %4 = vector.load %arg2[%c0_8, %c1, %c0_9, %c0_10, %c0_11] : memref<1x4x1x8x32xf32, #tpu.memory_space<vmem>>, vector<1x1x1x8x32xf32>
    %5 = vector.shape_cast %4 : vector<1x1x1x8x32xf32> to vector<8x32xf32>
    %6 = arith.maximumf %3, %5 : vector<8x32xf32>
    %c0_12 = arith.constant 0 : index
    %c2 = arith.constant 2 : index
    %c0_13 = arith.constant 0 : index
    %c0_14 = arith.constant 0 : index
    %c0_15 = arith.constant 0 : index
    %7 = vector.load %arg2[%c0_12, %c2, %c0_13, %c0_14, %c0_15] : memref<1x4x1x8x32xf32, #tpu.memory_space<vmem>>, vector<1x1x1x8x32xf32>
    %8 = vector.shape_cast %7 : vector<1x1x1x8x32xf32> to vector<8x32xf32>
    %9 = arith.maximumf %6, %8 : vector<8x32xf32>
    %c0_16 = arith.constant 0 : index
    %c3 = arith.constant 3 : index
    %c0_17 = arith.constant 0 : index
    %c0_18 = arith.constant 0 : index
    %c0_19 = arith.constant 0 : index
    %10 = vector.load %arg2[%c0_16, %c3, %c0_17, %c0_18, %c0_19] : memref<1x4x1x8x32xf32, #tpu.memory_space<vmem>>, vector<1x1x1x8x32xf32>
    %11 = vector.shape_cast %10 : vector<1x1x1x8x32xf32> to vector<8x32xf32>
    %12 = arith.maximumf %9, %11 : vector<8x32xf32>
    %cst = arith.constant 0.000000e+00 : f32
    %13 = vector.broadcast %cst : f32 to vector<8x32xf32>
    %cst_20 = arith.constant 0.000000e+00 : f32
    %14 = vector.broadcast %cst_20 : f32 to vector<8x32xf32>
    %c0_21 = arith.constant 0 : index
    %c0_22 = arith.constant 0 : index
    %c0_23 = arith.constant 0 : index
    %c0_24 = arith.constant 0 : index
    %c0_25 = arith.constant 0 : index
    %15 = vector.load %arg2[%c0_21, %c0_22, %c0_23, %c0_24, %c0_25] : memref<1x4x1x8x32xf32, #tpu.memory_space<vmem>>, vector<1x1x1x8x32xf32>
    %16 = vector.shape_cast %15 : vector<1x1x1x8x32xf32> to vector<8x32xf32>
    %17 = arith.subf %16, %12 : vector<8x32xf32>
    %18 = math.exp %17 : vector<8x32xf32>
    %19 = arith.addf %13, %18 : vector<8x32xf32>
    %c0_i32 = arith.constant 0 : i32
    %20 = vector.broadcast %c0_i32 : i32 to vector<8x32xi32>
    %21 = arith.cmpi eq, %1, %20 : vector<8x32xi32>
    %22 = arith.select %21, %16, %14 : vector<8x32xi1>, vector<8x32xf32>
    %c0_26 = arith.constant 0 : index
    %c1_27 = arith.constant 1 : index
    %c0_28 = arith.constant 0 : index
    %c0_29 = arith.constant 0 : index
    %c0_30 = arith.constant 0 : index
    %23 = vector.load %arg2[%c0_26, %c1_27, %c0_28, %c0_29, %c0_30] : memref<1x4x1x8x32xf32, #tpu.memory_space<vmem>>, vector<1x1x1x8x32xf32>
    %24 = vector.shape_cast %23 : vector<1x1x1x8x32xf32> to vector<8x32xf32>
    %25 = arith.subf %24, %12 : vector<8x32xf32>
    %26 = math.exp %25 : vector<8x32xf32>
    %27 = arith.addf %19, %26 : vector<8x32xf32>
    %c1_i32 = arith.constant 1 : i32
    %28 = vector.broadcast %c1_i32 : i32 to vector<8x32xi32>
    %29 = arith.cmpi eq, %1, %28 : vector<8x32xi32>
    %30 = arith.select %29, %24, %22 : vector<8x32xi1>, vector<8x32xf32>
    %c0_31 = arith.constant 0 : index
    %c2_32 = arith.constant 2 : index
    %c0_33 = arith.constant 0 : index
    %c0_34 = arith.constant 0 : index
    %c0_35 = arith.constant 0 : index
    %31 = vector.load %arg2[%c0_31, %c2_32, %c0_33, %c0_34, %c0_35] : memref<1x4x1x8x32xf32, #tpu.memory_space<vmem>>, vector<1x1x1x8x32xf32>
    %32 = vector.shape_cast %31 : vector<1x1x1x8x32xf32> to vector<8x32xf32>
    %33 = arith.subf %32, %12 : vector<8x32xf32>
    %34 = math.exp %33 : vector<8x32xf32>
    %35 = arith.addf %27, %34 : vector<8x32xf32>
    %c2_i32 = arith.constant 2 : i32
    %36 = vector.broadcast %c2_i32 : i32 to vector<8x32xi32>
    %37 = arith.cmpi eq, %1, %36 : vector<8x32xi32>
    %38 = arith.select %37, %32, %30 : vector<8x32xi1>, vector<8x32xf32>
    %c0_36 = arith.constant 0 : index
    %c3_37 = arith.constant 3 : index
    %c0_38 = arith.constant 0 : index
    %c0_39 = arith.constant 0 : index
    %c0_40 = arith.constant 0 : index
    %39 = vector.load %arg2[%c0_36, %c3_37, %c0_38, %c0_39, %c0_40] : memref<1x4x1x8x32xf32, #tpu.memory_space<vmem>>, vector<1x1x1x8x32xf32>
    %40 = vector.shape_cast %39 : vector<1x1x1x8x32xf32> to vector<8x32xf32>
    %41 = arith.subf %40, %12 : vector<8x32xf32>
    %42 = math.exp %41 : vector<8x32xf32>
    %43 = arith.addf %35, %42 : vector<8x32xf32>
    %c3_i32 = arith.constant 3 : i32
    %44 = vector.broadcast %c3_i32 : i32 to vector<8x32xi32>
    %45 = arith.cmpi eq, %1, %44 : vector<8x32xi32>
    %46 = arith.select %45, %40, %38 : vector<8x32xi1>, vector<8x32xf32>
    %47 = math.log %43 : vector<8x32xf32>
    %48 = arith.addf %12, %47 : vector<8x32xf32>
    %49 = arith.subf %48, %46 : vector<8x32xf32>
    %c255_i32 = arith.constant 255 : i32
    %50 = vector.broadcast %c255_i32 : i32 to vector<8x32xi32>
    %51 = arith.cmpi ne, %1, %50 : vector<8x32xi32>
    %cst_41 = arith.constant 0.000000e+00 : f32
    %52 = vector.broadcast %cst_41 : f32 to vector<8x32xf32>
    %53 = arith.select %51, %49, %52 : vector<8x32xi1>, vector<8x32xf32>
    %c0_42 = arith.constant 0 : index
    %c0_43 = arith.constant 0 : index
    %c0_44 = arith.constant 0 : index
    %c0_45 = arith.constant 0 : index
    %54 = vector.load %arg4[%c0_42, %c0_43, %c0_44, %c0_45] : memref<1x1x8x32xf32, #tpu.memory_space<vmem>>, vector<1x1x8x32xf32>
    %55 = vector.shape_cast %54 : vector<1x1x8x32xf32> to vector<8x32xf32>
    %56 = vector.shape_cast %53 : vector<8x32xf32> to vector<1x1x8x32xf32>
    tpu.vector_store %arg4[%c0_42, %c0_43, %c0_44, %c0_45], %56 {strides = array<i32>} : memref<1x1x8x32xf32, #tpu.memory_space<vmem>>, vector<1x1x8x32xf32>,
    %cst_46 = arith.constant 0.356674939 : f32
    %57 = vector.broadcast %cst_46 : f32 to vector<8x32xf32>
    %58 = arith.cmpf ogt, %53, %57 : vector<8x32xf32>
    %59 = arith.extui %58 : vector<8x32xi1> to vector<8x32xi32>
    %cst_47 = arith.constant dense<0> : vector<32xi32>
    %60 = vector.multi_reduction <add>, %59, %cst_47 [0] : vector<8x32xi32> to vector<32xi32>
    %61 = vector.shape_cast %60 : vector<32xi32> to vector<1x32xi32>
    %c0_48 = arith.constant 0 : index
    %c0_49 = arith.constant 0 : index
    %c0_50 = arith.constant 0 : index
    %c0_51 = arith.constant 0 : index
    %62 = vector.load %arg5[%c0_48, %c0_49, %c0_50, %c0_51] : memref<1x1x1x32xi32, #tpu.memory_space<vmem>>, vector<1x1x1x32xi32>
    %63 = vector.shape_cast %62 : vector<1x1x1x32xi32> to vector<1x32xi32>
    %64 = vector.shape_cast %61 : vector<1x32xi32> to vector<1x1x1x32xi32>
    tpu.vector_store %arg5[%c0_48, %c0_49, %c0_50, %c0_51], %64 {strides = array<i32>} : memref<1x1x1x32xi32, #tpu.memory_space<vmem>>, vector<1x1x1x32xi32>,
    %cst_52 = arith.constant 0.000000e+00 : f32
    %65 = vector.broadcast %cst_52 : f32 to vector<8x32xf32>
    %66 = arith.select %58, %53, %65 : vector<8x32xi1>, vector<8x32xf32>
    %cst_53 = arith.constant dense<0.000000e+00> : vector<32xf32>
    %67 = vector.multi_reduction <add>, %66, %cst_53 [0] : vector<8x32xf32> to vector<32xf32>
    %68 = vector.shape_cast %67 : vector<32xf32> to vector<1x32xf32>
    %c0_54 = arith.constant 0 : index
    %c0_55 = arith.constant 0 : index
    %c0_56 = arith.constant 0 : index
    %c0_57 = arith.constant 0 : index
    %69 = vector.load %arg6[%c0_54, %c0_55, %c0_56, %c0_57] : memref<1x1x1x32xf32, #tpu.memory_space<vmem>>, vector<1x1x1x32xf32>
    %70 = vector.shape_cast %69 : vector<1x1x1x32xf32> to vector<1x32xf32>
    %71 = vector.shape_cast %68 : vector<1x32xf32> to vector<1x1x1x32xf32>
    tpu.vector_store %arg6[%c0_54, %c0_55, %c0_56, %c0_57], %71 {strides = array<i32>} : memref<1x1x1x32xf32, #tpu.memory_space<vmem>>, vector<1x1x1x32xf32>,
    return
  }
  func.func @transform_0(%arg0: i32, %arg1: i32) -> (i32, i32, i32, i32, i32) {
    %c0_i32 = arith.constant 0 : i32
    %c0_i32_0 = arith.constant 0 : i32
    %c0_i32_1 = arith.constant 0 : i32
    %c0_i32_2 = arith.constant 0 : i32
    return %arg0, %c0_i32, %arg1, %c0_i32_0, %c0_i32_1 : i32, i32, i32, i32, i32
  }
  func.func @transform_1(%arg0: i32, %arg1: i32) -> (i32, i32, i32, i32) {
    %c0_i32 = arith.constant 0 : i32
    %c0_i32_0 = arith.constant 0 : i32
    %c0_i32_1 = arith.constant 0 : i32
    return %arg0, %arg1, %c0_i32, %c0_i32_0 : i32, i32, i32, i32
  }
  func.func @transform_2(%arg0: i32, %arg1: i32) -> (i32, i32, i32, i32) {
    %c0_i32 = arith.constant 0 : i32
    %c0_i32_0 = arith.constant 0 : i32
    %c0_i32_1 = arith.constant 0 : i32
    return %arg0, %arg1, %c0_i32, %c0_i32_0 : i32, i32, i32, i32
  }
  func.func @transform_3(%arg0: i32, %arg1: i32) -> (i32, i32, i32, i32) {
    %c0_i32 = arith.constant 0 : i32
    %c0_i32_0 = arith.constant 0 : i32
    %c0_i32_1 = arith.constant 0 : i32
    return %arg0, %arg1, %c0_i32, %c0_i32_0 : i32, i32, i32, i32
  }
  func.func @transform_4(%arg0: i32, %arg1: i32) -> (i32, i32, i32, i32) {
    %c0_i32 = arith.constant 0 : i32
    %c0_i32_0 = arith.constant 0 : i32
    %c0_i32_1 = arith.constant 0 : i32
    return %arg0, %arg1, %c0_i32, %c0_i32_0 : i32, i32, i32, i32
  }
}

</mosaic_0001>

<bundles_post_ra>
// kernel: ohem_ce_loss.1
= control target key start
LH: loop header
LB: loop body
LE: loop exit
PB: predicated region body
PF: predicated region fallthrough
CT: control target
= control target key end

     0   :  { %s613_s15 = smov 0   ;;  %s615_s16 = smov 0   ;;  %s661_s0 = inlined_call_operand.vmem [shape: f32[2,4,1,8,32], index: 0, kind: input, shape index: {}]   ;;  %s662_s1 = inlined_call_operand.vmem [shape: s32[2,1,8,32], index: 1, kind: input, shape index: {}]   ;;  %s663_s2 = inlined_call_operand.vmem [shape: f32[2,1,8,32], index: 2, kind: output, shape index: {0}]   ;;  %s664_s3 = inlined_call_operand.vmem [shape: s32[2,1,1,32], index: 3, kind: output, shape index: {1}]   ;;  %s665_s4 = inlined_call_operand.vmem [shape: f32[2,1,1,32], index: 4, kind: output, shape index: {2}]  }
   0x1   :  { %s617_s17 = smov 0  }
   0x2 LB: > { %s27_s18 = sadd.s32 1, %s581_s16  ;;  %p517_p0 = scmp.ge.s32.totalorder %s585_s17, 1  ;;  %s585_s17 = sphi %s617_s17, %s15_s17   ;;  %s581_s16 = sphi %s615_s16, %s667_s16   ;;  %s577_s15 = sphi %s613_s15, %s666_s15  }
   0x3   : > { %p29_p1 = scmp.ge.s32.totalorder %s27_s18, 2  ;;  %p204_p2 = scmp.lt.s32.totalorder %s585_s17, 3 }
   0x5   : > { %s669_s18 = smov (%p29_p1, %s27_s18), 0  ;;  %p205_p3 = pnand %p517_p0, %p204_p2 }
   0x6   : > { %p254_p4 = scmp.lt.s32.totalorder (!%p205_p3), %s577_s15, 1 }
   0x7   : > { %208 = sbr.rel (%p205_p3) target bundleno = 71 (0x47), region = 28 }
   0xc   : > { %s671_s15 = smov (!%p254_p4, %s577_s15), 1  ;;  %vm329_vm5 = vcmask 261120   ;;  %v587_v32 = vmov 0   ;;  %vm340_vm7 = vcmask 253952  }
   0xd   : > { %s527_s19 = sshll.u32 %s671_s15, 5  ;;  %s520_s23 = sshll.u32 %s671_s15, 3 }
   0xe   : > { %s261_s22 = scalar_lea.vmem %s661_s0, %s527_s19  ;;  %s268_s26 = scalar_lea.vmem %s662_s1, %s520_s23 }
   0xf   : > { %v289_v0 = vld [vmem:[%s261_s22] sm:$0xff]  ;;  %v522_v1 = vld [vmem:[%s261_s22 + $0x8] sm:$0xff]  ;;  %v523_v3 = vld [vmem:[%s261_s22 + $0x10] sm:$0xff]  ;;  %s275_s29 = scalar_lea.vmem %s663_s2, %s520_s23  ;;  %s281_s6 = scalar_lea.vmem %s664_s3, %s671_s15 }
  0x10   : > { %v292_v2 = vmax.f32 %v289_v0, %v522_v1  ;;  %v524_v4 = vld [vmem:[%s261_s22 + $0x18] sm:$0xff]  ;;  %v288_v17 = vld [vmem:[%s268_s26] sm:$0xff]  ;;  %s287_s9 = scalar_lea.vmem %s665_s4, %s671_s15 }
  0x11   : > { %vm303_vm0 = vcmp.eq.s32.totalorder %v288_v17, 0  ;;  %vm309_vm1 = vcmp.eq.s32.totalorder %v288_v17, 1  ;;  %vm315_vm2 = vcmp.eq.s32.totalorder %v288_v17, 2  ;;  %vm321_vm3 = vcmp.eq.s32.totalorder %v288_v17, 3 }
  0x12   : > { %v295_v5 = vmax.f32 %v292_v2, %v523_v3  ;;  %v304_v23 = vsel %vm303_vm0, %v289_v0, 0.0  ;;  %vm327_vm4 = vcmp.ne.s32.totalorder %v288_v17, 255 }
  0x13   : > { %v310_v24 = vsel %vm309_vm1, %v522_v1, %v304_v23 }
  0x14   : > { %v298_v6 = vmax.f32 %v295_v5, %v524_v4  ;;  %v316_v25 = vsel %vm315_vm2, %v523_v3, %v310_v24 }
  0x15   : > { %v322_v28 = vsel %vm321_vm3, %v524_v4, %v316_v25 }
  0x16   : > { %v299_v7 = vsub.f32 %v289_v0, %v298_v6  ;;  %v305_v8 = vsub.f32 %v522_v1, %v298_v6  ;;  %v311_v9 = vsub.f32 %v523_v3, %v298_v6  ;;  %v317_v10 = vsub.f32 %v524_v4, %v298_v6 }
  0x18   : > { %v300_v11 = vmul.f32 1.442695, %v299_v7  ;;  %v306_v12 = vmul.f32 1.442695, %v305_v8  ;;  %v312_v13 = vmul.f32 1.442695, %v311_v9 }
  0x19   : > { %v318_v14 = vmul.f32 1.442695, %v317_v10 }
  0x1a   : > { %553 = vpow2.f32 %v300_v11 }
  0x1b   : > { %555 = vpow2.f32 %v306_v12 }
  0x1c   : > { %557 = vpow2.f32 %v312_v13 }
  0x1d   : > { %559 = vpow2.f32 %v318_v14 }
  0x20   : > { %v554_v15 = vpop.eup %553 }
  0x21   : > { %v556_v16 = vpop.eup %555 }
  0x22   : > { %v558_v18 = vpop.eup %557  ;;  %v308_v19 = vadd.f32 %v556_v16, %v554_v15 }
  0x23   : > { %v560_v20 = vpop.eup %559 }
  0x24   : > { %v314_v21 = vadd.f32 %v558_v18, %v308_v19 }
  0x26   : > { %v320_v22 = vadd.f32 %v560_v20, %v314_v21 }
  0x28   : > { %561 = vlog2.f32 %v320_v22 }
  0x2e   : > { %v562_v26 = vpop.eup %561 }
  0x2f   : > { %v324_v27 = vmul.f32 0.6931472, %v562_v26 }
  0x31   : > { %v325_v29 = vadd.f32 %v324_v27, %v298_v6 }
  0x33   : > { %v326_v30 = vsub.f32 %v325_v29, %v322_v28 }
  0x35   : > { %v328_v31 = vsel %vm327_vm4, %v326_v30, 0.0 }
  0x36   : > { %330 = vst.msk [vmem:[%s275_s29] sm:$0xff] %vm329_vm5, %v328_v31  ;;  %vm331_vm6 = vcmp.gt.f32.partialorder %v328_v31, 0.35667494 }
  0x37   : > { %v332_v33 = vsel %vm331_vm6, 1, %v587_v32  ;;  %v342_v34 = vsel %vm331_vm6, %v328_v31, 0.0 }
  0x38   : > { %v333_v35 = vsel %vm329_vm5, %v332_v33, 0  ;;  %v343_v36 = vsel %vm329_vm5, %v342_v34, 0.0 }
  0x39   : > { %v334_v37 = vrot.slane %v333_v35, 4  ;;  %v344_v38 = vrot.slane %v343_v36, 4 }
  0x3b   : > { %v335_v39 = vadd.s32 %v334_v37, %v333_v35  ;;  %v345_v40 = vadd.f32 %v344_v38, %v343_v36 }
  0x3d   : > { %v336_v41 = vrot.slane %v335_v39, 2  ;;  %v346_v42 = vrot.slane %v345_v40, 2 }
  0x3f   : > { %v337_v43 = vadd.s32 %v336_v41, %v335_v39  ;;  %v347_v44 = vadd.f32 %v346_v42, %v345_v40 }
  0x41   : > { %v338_v45 = vrot.slane %v337_v43, 1  ;;  %v348_v46 = vrot.slane %v347_v44, 1 }
  0x43   : > { %v339_v47 = vadd.s32 %v338_v45, %v337_v43  ;;  %v349_v48 = vadd.f32 %v348_v46, %v347_v44 }
  0x45   : > { %341 = vst.msk [vmem:[%s281_s6] sm:$0x1] %vm340_vm7, %v339_v47 }
  0x46   : > { %350 = vst.msk [vmem:[%s287_s9] sm:$0x1] %vm340_vm7, %v349_v48 }
  0x47 PF: > { %s15_s17 = sadd.s32 1, %s585_s17   ;;  %s666_s15 = smov %s581_s16 }
  0x48   : > { %p12_p5 = scmp.ge.s32.totalorder %s15_s17, 4   ;;  %s667_s16 = smov %s669_s18 }
  0x4a   :  { %14 = sbr.rel (!%p12_p5) target bundleno = 2 (0x2), region = 88 }

</bundles_post_ra>
